<compile_context>
chip_gen: v7x
topology: tpu7x:2x2x1
jax: 0.10.0
libtpu: 0.0.40
codegen_flags: <defaults>
</compile_context>

<pallas_src>
import functools

import jax
import jax.numpy as jnp
from jax import lax
from jax.experimental import pallas as pl
from jax.experimental.pallas import tpu as pltpu


def _silu(x):
    return x * jax.nn.sigmoid(x)


def _align8(x):
    return ((x + 7) // 8) * 8


# ----------------------------------------------------------------------------
# One-time parameter packing (hoisted out of the per-call path).
# ----------------------------------------------------------------------------
def pack_gcl_params(params, num_nodes, edges_in_d):
    """Pack the 8 weight/bias arrays into 2 tile-aligned VMEM slabs."""
    De = int(edges_in_d)
    we1 = jnp.asarray(params['we1'], jnp.float32)          # [2F+De, H]
    H = we1.shape[1]
    F = (we1.shape[0] - De) // 2
    wn2 = jnp.asarray(params['wn2'], jnp.float32)           # [H, F_out]
    F_out = wn2.shape[1]
    N = int(num_nodes)

    # Fused-matmul contraction size: 2N one-hot rows + De edge-attr rows
    # + 1 ones row (folds be1) + 1 stashed edge-mask row, padded to 16.
    kmin = 2 * N + De + 2
    Kpad = ((kmin + 15) // 16) * 16
    Ke = Kpad - 2 * N                                        # edge-side rows

    off_we2 = _align8(2 * F + Ke)
    off_wn2 = _align8(F + H + 1)

    # Edge-MLP slab: [we1 | 0], be1 row, zero pad, then [we2.T | be2] block.
    we_pack = jnp.zeros((off_we2 + H, H + 1), jnp.float32)
    we_pack = we_pack.at[0:2 * F + De, 0:H].set(we1)
    we_pack = we_pack.at[2 * F + De, 0:H].set(
        jnp.asarray(params['be1'], jnp.float32).reshape(H))
    we_pack = we_pack.at[off_we2:off_we2 + H, 0:H].set(
        jnp.asarray(params['we2'], jnp.float32).T)           # pre-transposed
    we_pack = we_pack.at[off_we2:off_we2 + H, H].set(
        jnp.asarray(params['be2'], jnp.float32).reshape(H))

    # Node-MLP slab: wn1, bn1 row, pad, wn2, bn2 row.
    Hn = max(H, F_out)
    wn_pack = jnp.zeros((off_wn2 + H + 1, Hn), jnp.float32)
    wn_pack = wn_pack.at[0:F + H, 0:H].set(
        jnp.asarray(params['wn1'], jnp.float32))
    wn_pack = wn_pack.at[F + H, 0:H].set(
        jnp.asarray(params['bn1'], jnp.float32).reshape(H))
    wn_pack = wn_pack.at[off_wn2:off_wn2 + H, 0:F_out].set(wn2)
    wn_pack = wn_pack.at[off_wn2 + H, 0:F_out].set(
        jnp.asarray(params['bn2'], jnp.float32).reshape(F_out))

    dims = dict(N=N, F=F, H=H, F_out=F_out, De=De, Ke=Ke,
                off_we2=off_we2, off_wn2=off_wn2)
    return dict(we_pack=we_pack, wn_pack=wn_pack, dims=dims)


# ----------------------------------------------------------------------------
# Kernel
# ----------------------------------------------------------------------------
def gcl_kernel(norm_factor, aggregation_method, mm_dtype, dims,
               hnm_ref, idx_ref, edge_ext_ref, we_ref, wn_ref,
               hout_ref, mijT_ref):
    N, F, H, F_out, De, Ke, off_we2, off_wn2 = dims
    E = idx_ref.shape[1]
    f32 = jnp.float32
    mm = lambda x: x.astype(mm_dtype)          # matmul-operand cast (bf16/f32)

    hnm = hnm_ref[...]                         # [N, F+1] f32
    h = hnm[:, 0:F]                            # [N, F]
    node_mask = hnm[:, F:F + 1]                # [N, 1]
    h_mm = mm(h)                               # hoisted operand cast of h

    row = idx_ref[0:1, :]                      # [1, E] int32
    col = idx_ref[1:2, :]                      # [1, E] int32

    # --- node-side projections of the first edge-MLP layer (tiny matmuls) ---
    we1s = mm(we_ref[0:F, 0:H])
    we1t = mm(we_ref[F:2 * F, 0:H])
    hs = jnp.dot(h_mm, we1s, preferred_element_type=f32)     # [N, H]
    ht = jnp.dot(h_mm, we1t, preferred_element_type=f32)     # [N, H]

    # Stacked "weights" of the fused gather + first-layer matmul: [Kpad, H].
    # Rows: hs (N), ht (N), we1_edge_attr (De), be1 (1), zeros (pad) -- be1 is
    # folded into the matmul; pad keeps K a full sublane multiple.
    we1e_ext = mm(we_ref[2 * F:2 * F + Ke, 0:H])              # [Ke, H]
    stacked = jnp.concatenate([mm(hs), mm(ht), we1e_ext], axis=0)

    # --- transposed one-hots: node index on sublanes, edges on lanes ---
    iota_ne = lax.broadcasted_iota(jnp.int32, (N, E), 0)      # [N, E]
    src_ohT = (iota_ne == row).astype(mm_dtype)               # exact in bf16
    tgt_ohT = (iota_ne == col).astype(mm_dtype)
    edge_ext = edge_ext_ref[...]               # [Ke, E]: eattrT, ones, emask, 0
    combinedT = jnp.concatenate([src_ohT, tgt_ohT, mm(edge_ext)], axis=0)

    # --- fused gather + edge-MLP layer 1 (bias folded), then layer 2 ---
    pre1T = lax.dot_general(stacked, combinedT,
                            dimension_numbers=(((0,), (0,)), ((), ())),
                            preferred_element_type=f32)       # [H, E]
    ehidT = _silu(pre1T)

    we2blk = we_ref[off_we2:off_we2 + H, :]                   # [H, H+1]
    we2T = mm(we2blk[:, 0:H])                                 # pre-transposed
    be2col = we2blk[:, H:H + 1]                               # [H, 1]
    mijT = _silu(jnp.dot(we2T, mm(ehidT), preferred_element_type=f32)
                 + be2col)                                    # [H, E]
    mijT_ref[...] = mijT          # lane-dense (E on lanes) full-width store

    # TODO(synk): attention=True path (att_mlp Linear+Sigmoid gate) not
    # implemented; the module is instantiated with attention=False.
    emaskT = edge_ext[De + 1:De + 2, :]                       # [1, E]
    edge_featT = mijT * emaskT                                # [H, E]

    # --- unsorted_segment_sum over `row`: reuse src one-hot, contract over E --
    agg = lax.dot_general(src_ohT, mm(edge_featT),
                          dimension_numbers=(((1,), (1,)), ((), ())),
                          preferred_element_type=f32)         # [N, H]
    if aggregation_method == 'sum':
        agg = agg * (1.0 / norm_factor)
    else:  # 'mean' -- exact divide; counts path kept in f32
        counts = jnp.sum(src_ohT.astype(f32), axis=1, keepdims=True)
        counts = jnp.maximum(counts, 1.0)
        agg = agg / counts

    # --- node MLP: Linear -> SiLU -> Linear, residual add, node mask ---
    # TODO(synk): node_attr concat branch not implemented (nodes_att_dim=0).
    wn1x = mm(wn_ref[0:F, 0:H])
    wn1a = mm(wn_ref[F:F + H, 0:H])
    bn1 = wn_ref[F + H:F + H + 1, 0:H]
    wn2 = mm(wn_ref[off_wn2:off_wn2 + H, 0:F_out])
    bn2 = wn_ref[off_wn2 + H:off_wn2 + H + 1, 0:F_out]

    npre1 = (jnp.dot(h_mm, wn1x, preferred_element_type=f32)
             + jnp.dot(mm(agg), wn1a, preferred_element_type=f32)
             + bn1)
    nhid = _silu(npre1)
    out = h + jnp.dot(mm(nhid), wn2, preferred_element_type=f32) + bn2
    hout_ref[...] = out * node_mask


# ----------------------------------------------------------------------------
# Wrapper
# ----------------------------------------------------------------------------
def gcl_forward(h, row, col, edge_attr, edge_mask, node_mask, packed,
                normalization_factor=1.0, aggregation_method='sum',
                matmul_dtype=jnp.bfloat16):
    """Pallas-backed GCL forward.

    Returns (h_out [N, F_out], mij_T [H, E]).  mij is returned in the kernel's
    lane-dense [H, E] layout (transpose at the consumer if [E, H] is needed;
    materializing the transpose here would cost as much as the kernel).
    """
    d = packed['dims']
    N, F, H, F_out, De, Ke = d['N'], d['F'], d['H'], d['F_out'], d['De'], d['Ke']
    E = row.shape[0]
    assert h.shape == (N, F)

    # Per-call data prep (tiny): 3 consolidated activation-side inputs.
    h_nm = jnp.concatenate(
        [h.astype(jnp.float32),
         node_mask.astype(jnp.float32).reshape(N, 1)], axis=1)          # [N,F+1]
    idx = jnp.stack([row.astype(jnp.int32), col.astype(jnp.int32)], 0)  # [2,E]
    edge_ext = jnp.zeros((Ke, E), jnp.float32)
    edge_ext = edge_ext.at[0:De, :].set(edge_attr.astype(jnp.float32).T)
    edge_ext = edge_ext.at[De, :].set(1.0)                   # ones row -> be1
    edge_ext = edge_ext.at[De + 1, :].set(
        edge_mask.astype(jnp.float32).reshape(E))            # stashed edge mask

    kernel = functools.partial(
        gcl_kernel, float(normalization_factor), aggregation_method,
        matmul_dtype,
        (N, F, H, F_out, De, Ke, d['off_we2'], d['off_wn2']))

    vmem = pl.BlockSpec(memory_space=pltpu.MemorySpace.VMEM)
    h_out, mij_T = pl.pallas_call(
        kernel,
        out_shape=(jax.ShapeDtypeStruct((N, F_out), jnp.float32),
                   jax.ShapeDtypeStruct((H, E), jnp.float32)),
        in_specs=[vmem] * 5,
        out_specs=(vmem, vmem),
    )(h_nm, idx, edge_ext, packed['we_pack'], packed['wn_pack'])
    return h_out, mij_T


# ----------------------------------------------------------------------------
# Pure-JAX reference mirroring the PyTorch module (attention=False)
# ----------------------------------------------------------------------------
def gcl_reference(h, row, col, edge_attr, edge_mask, node_mask, params,
                  normalization_factor=1.0, aggregation_method='sum'):
    source, target = h[row], h[col]
    ein = jnp.concatenate([source, target, edge_attr], axis=1)
    ehid = jax.nn.silu(ein @ params['we1'] + params['be1'])
    mij = jax.nn.silu(ehid @ params['we2'] + params['be2'])
    edge_feat = mij * edge_mask
    N = h.shape[0]
    agg = jnp.zeros((N, mij.shape[1]), jnp.float32).at[row].add(edge_feat)
    if aggregation_method == 'sum':
        agg = agg / normalization_factor
    else:
        counts = jnp.zeros((N, 1), jnp.float32).at[row].add(
            jnp.ones((row.shape[0], 1), jnp.float32))
        counts = jnp.where(counts == 0.0, 1.0, counts)
        agg = agg / counts
    nin = jnp.concatenate([h, agg], axis=1)
    nhid = jax.nn.silu(nin @ params['wn1'] + params['bn1'])
    out = h + (nhid @ params['wn2'] + params['bn2'])
    return out * node_mask, mij


if __name__ == "__main__":
    # Small config: input_nf = output_nf = hidden_nf = 32, edges_in_d = 4,
    # nodes_att_dim = 0, attention = False.
    N, E = 16, 256
    F = H = F_out = 32
    De = 4
    norm_factor = 4.0

    key = jax.random.PRNGKey(0)
    ks = jax.random.split(key, 16)

    h = jax.random.normal(ks[0], (N, F), jnp.float32)
    row = jax.random.randint(ks[1], (E,), 0, N, jnp.int32)
    col = jax.random.randint(ks[2], (E,), 0, N, jnp.int32)
    edge_attr = jax.random.normal(ks[3], (E, De), jnp.float32)
    edge_mask = (jax.random.uniform(ks[4], (E, 1)) > 0.2).astype(jnp.float32)
    node_mask = (jax.random.uniform(ks[5], (N, 1)) > 0.1).astype(jnp.float32)

    def lin(kw, kb, fan_in, fan_out):
        bound = 1.0 / (fan_in ** 0.5)
        w = jax.random.uniform(kw, (fan_in, fan_out), jnp.float32, -bound, bound)
        b = jax.random.uniform(kb, (1, fan_out), jnp.float32, -bound, bound)
        return w, b

    we1, be1 = lin(ks[6], ks[7], 2 * F + De, H)
    we2, be2 = lin(ks[8], ks[9], H, H)
    wn1, bn1 = lin(ks[10], ks[11], F + H, H)
    wn2, bn2 = lin(ks[12], ks[13], H, F_out)
    params = dict(we1=we1, be1=be1, we2=we2, be2=be2,
                  wn1=wn1, bn1=bn1, wn2=wn2, bn2=bn2)

    # One-time weight packing (hoisted out of the per-call path).
    packed = pack_gcl_params(params, num_nodes=N, edges_in_d=De)
    jax.block_until_ready((packed['we_pack'], packed['wn_pack']))

    # --- 1) strict check: f32 matmul operands, 'sum' aggregation ---
    h_f32, mijT_f32 = gcl_forward(h, row, col, edge_attr, edge_mask, node_mask,
                                  packed, normalization_factor=norm_factor,
                                  aggregation_method='sum',
                                  matmul_dtype=jnp.float32)
    jax.block_until_ready((h_f32, mijT_f32))
    h_ref, mij_ref = gcl_reference(h, row, col, edge_attr, edge_mask, node_mask,
                                   params, normalization_factor=norm_factor,
                                   aggregation_method='sum')
    assert jnp.allclose(mijT_f32.T, mij_ref, atol=1e-3, rtol=1e-3), "mij mismatch (f32)"
    assert jnp.allclose(h_f32, h_ref, atol=1e-3, rtol=1e-3), "h mismatch (f32)"

    # --- 2) perf path: bf16 matmul operands (f32 accumulation / elementwise) ---
    h_bf, mijT_bf = gcl_forward(h, row, col, edge_attr, edge_mask, node_mask,
                                packed, normalization_factor=norm_factor,
                                aggregation_method='sum',
                                matmul_dtype=jnp.bfloat16)
    jax.block_until_ready((h_bf, mijT_bf))
    assert jnp.allclose(mijT_bf.T, mij_ref, atol=5e-2, rtol=5e-2), "mij mismatch (bf16)"
    assert jnp.allclose(h_bf, h_ref, atol=5e-2, rtol=5e-2), "h mismatch (bf16)"

    # --- 3) 'mean' aggregation path (exact per-node divide) ---
    h_m, mijT_m = gcl_forward(h, row, col, edge_attr, edge_mask, node_mask,
                              packed, normalization_factor=norm_factor,
                              aggregation_method='mean',
                              matmul_dtype=jnp.float32)
    jax.block_until_ready((h_m, mijT_m))
    h_mref, mij_mref = gcl_reference(h, row, col, edge_attr, edge_mask,
                                     node_mask, params,
                                     normalization_factor=norm_factor,
                                     aggregation_method='mean')
    assert jnp.allclose(mijT_m.T, mij_mref, atol=1e-3, rtol=1e-3), "mij mismatch (mean)"
    assert jnp.allclose(h_m, h_mref, atol=1e-3, rtol=1e-3), "h mismatch (mean)"

    print("KERNEL_OK")
</pallas_src>

<mosaic_0001>
module attributes {stable_mosaic.version = 11 : i64} {
  func.func @gcl_kernel(%arg0: memref<16x33xf32, #tpu.memory_space<vmem>>, %arg1: memref<2x256xi32, #tpu.memory_space<vmem>>, %arg2: memref<16x256xf32, #tpu.memory_space<vmem>>, %arg3: memref<112x33xf32, #tpu.memory_space<vmem>>, %arg4: memref<105x32xf32, #tpu.memory_space<vmem>>, %arg5: memref<16x32xf32, #tpu.memory_space<vmem>>, %arg6: memref<32x256xf32, #tpu.memory_space<vmem>>) attributes {dimension_semantics = [], scalar_prefetch = 0 : i64, scratch_operands = 0 : i64, tpu.core_type = #tpu.core_type<tc>} {
    %c0 = arith.constant 0 : index
    %c0_0 = arith.constant 0 : index
    %0 = vector.load %arg0[%c0, %c0_0] : memref<16x33xf32, #tpu.memory_space<vmem>>, vector<16x33xf32>
    %1 = vector.extract_strided_slice %0 {offsets = [0, 0], sizes = [16, 32], strides = [1, 1]} : vector<16x33xf32> to vector<16x32xf32>
    %2 = vector.extract_strided_slice %0 {offsets = [0, 32], sizes = [16, 1], strides = [1, 1]} : vector<16x33xf32> to vector<16x1xf32>
    %c0_1 = arith.constant 0 : index
    %c0_2 = arith.constant 0 : index
    %3 = vector.load %arg1[%c0_1, %c0_2] : memref<2x256xi32, #tpu.memory_space<vmem>>, vector<1x256xi32>
    %c1 = arith.constant 1 : index
    %c0_3 = arith.constant 0 : index
    %4 = vector.load %arg1[%c1, %c0_3] : memref<2x256xi32, #tpu.memory_space<vmem>>, vector<1x256xi32>
    %c0_4 = arith.constant 0 : index
    %c0_5 = arith.constant 0 : index
    %5 = vector.load %arg3[%c0_4, %c0_5] : memref<112x33xf32, #tpu.memory_space<vmem>>, vector<32x32xf32>
    %c32 = arith.constant 32 : index
    %c0_6 = arith.constant 0 : index
    %6 = vector.load %arg3[%c32, %c0_6] : memref<112x33xf32, #tpu.memory_space<vmem>>, vector<32x32xf32>
    %cst = arith.constant dense<0.000000e+00> : vector<16x32xf32>
    %7 = tpu.matmul %1, %5, %cst {dimension_numbers = #tpu.dot_dimension_numbers<[1], [0], [0], [1], [0, 0, 1, 1], [], []>} : vector<16x32xf32>, vector<32x32xf32>, vector<16x32xf32> -> vector<16x32xf32>
    %cst_7 = arith.constant dense<0.000000e+00> : vector<16x32xf32>
    %8 = tpu.matmul %1, %6, %cst_7 {dimension_numbers = #tpu.dot_dimension_numbers<[1], [0], [0], [1], [0, 0, 1, 1], [], []>} : vector<16x32xf32>, vector<32x32xf32>, vector<16x32xf32> -> vector<16x32xf32>
    %c64 = arith.constant 64 : index
    %c0_8 = arith.constant 0 : index
    %9 = vector.load %arg3[%c64, %c0_8] : memref<112x33xf32, #tpu.memory_space<vmem>>, vector<16x32xf32>
    %10 = tpu.concatenate %7, %8, %9 in 0 : vector<16x32xf32>, vector<16x32xf32>, vector<16x32xf32> -> vector<48x32xf32>
    %11 = tpu.iota {dimensions = array<i32: 0>} : vector<16x256xi32>
    %12 = vector.broadcast %3 : vector<1x256xi32> to vector<16x256xi32>
    %13 = arith.cmpi eq, %11, %12 : vector<16x256xi32>
    %14 = arith.extui %13 : vector<16x256xi1> to vector<16x256xi32>
    %15 = arith.sitofp %14 : vector<16x256xi32> to vector<16x256xf32>
    %16 = vector.broadcast %4 : vector<1x256xi32> to vector<16x256xi32>
    %17 = arith.cmpi eq, %11, %16 : vector<16x256xi32>
    %18 = arith.extui %17 : vector<16x256xi1> to vector<16x256xi32>
    %19 = arith.sitofp %18 : vector<16x256xi32> to vector<16x256xf32>
    %c0_9 = arith.constant 0 : index
    %c0_10 = arith.constant 0 : index
    %20 = vector.load %arg2[%c0_9, %c0_10] : memref<16x256xf32, #tpu.memory_space<vmem>>, vector<16x256xf32>
    %21 = tpu.concatenate %15, %19, %20 in 0 : vector<16x256xf32>, vector<16x256xf32>, vector<16x256xf32> -> vector<48x256xf32>
    %cst_11 = arith.constant dense<0.000000e+00> : vector<32x256xf32>
    %22 = tpu.matmul %10, %21, %cst_11 {dimension_numbers = #tpu.dot_dimension_numbers<[0], [0], [1], [1], [0, 1, 1, 1], [], []>} : vector<48x32xf32>, vector<48x256xf32>, vector<32x256xf32> -> vector<32x256xf32>
    %23 = arith.negf %22 : vector<32x256xf32>
    %24 = math.exp %23 : vector<32x256xf32>
    %cst_12 = arith.constant 1.000000e+00 : f32
    %25 = vector.broadcast %cst_12 : f32 to vector<32x256xf32>
    %26 = arith.addf %25, %24 : vector<32x256xf32>
    %27 = arith.divf %25, %26 : vector<32x256xf32>
    %28 = arith.mulf %22, %27 : vector<32x256xf32>
    %c80 = arith.constant 80 : index
    %c0_13 = arith.constant 0 : index
    %29 = vector.load %arg3[%c80, %c0_13] : memref<112x33xf32, #tpu.memory_space<vmem>>, vector<32x33xf32>
    %30 = vector.extract_strided_slice %29 {offsets = [0, 0], sizes = [32, 32], strides = [1, 1]} : vector<32x33xf32> to vector<32x32xf32>
    %31 = vector.extract_strided_slice %29 {offsets = [0, 32], sizes = [32, 1], strides = [1, 1]} : vector<32x33xf32> to vector<32x1xf32>
    %cst_14 = arith.constant dense<0.000000e+00> : vector<32x256xf32>
    %32 = tpu.matmul %30, %28, %cst_14 {dimension_numbers = #tpu.dot_dimension_numbers<[1], [0], [0], [1], [0, 0, 1, 1], [], []>} : vector<32x32xf32>, vector<32x256xf32>, vector<32x256xf32> -> vector<32x256xf32>
    %33 = vector.broadcast %31 : vector<32x1xf32> to vector<32x256xf32>
    %34 = arith.addf %32, %33 : vector<32x256xf32>
    %35 = arith.negf %34 : vector<32x256xf32>
    %36 = math.exp %35 : vector<32x256xf32>
    %cst_15 = arith.constant 1.000000e+00 : f32
    %37 = vector.broadcast %cst_15 : f32 to vector<32x256xf32>
    %38 = arith.addf %37, %36 : vector<32x256xf32>
    %39 = arith.divf %37, %38 : vector<32x256xf32>
    %40 = arith.mulf %34, %39 : vector<32x256xf32>
    %c0_16 = arith.constant 0 : index
    %c0_17 = arith.constant 0 : index
    %41 = vector.load %arg6[%c0_16, %c0_17] : memref<32x256xf32, #tpu.memory_space<vmem>>, vector<32x256xf32>
    tpu.vector_store %arg6[%c0_16, %c0_17], %40 {strides = array<i32>} : memref<32x256xf32, #tpu.memory_space<vmem>>, vector<32x256xf32>,
    %42 = vector.extract_strided_slice %20 {offsets = [5, 0], sizes = [1, 256], strides = [1, 1]} : vector<16x256xf32> to vector<1x256xf32>
    %43 = vector.broadcast %42 : vector<1x256xf32> to vector<32x256xf32>
    %44 = arith.mulf %40, %43 : vector<32x256xf32>
    %cst_18 = arith.constant dense<0.000000e+00> : vector<16x32xf32>
    %45 = tpu.matmul %15, %44, %cst_18 {dimension_numbers = #tpu.dot_dimension_numbers<[1], [1], [0], [0], [0, 0, 1, 0], [], []>} : vector<16x256xf32>, vector<32x256xf32>, vector<16x32xf32> -> vector<16x32xf32>
    %cst_19 = arith.constant 2.500000e-01 : f32
    %46 = vector.broadcast %cst_19 : f32 to vector<16x32xf32>
    %47 = arith.mulf %45, %46 : vector<16x32xf32>
    %c0_20 = arith.constant 0 : index
    %c0_21 = arith.constant 0 : index
    %48 = vector.load %arg4[%c0_20, %c0_21] : memref<105x32xf32, #tpu.memory_space<vmem>>, vector<32x32xf32>
    %c32_22 = arith.constant 32 : index
    %c0_23 = arith.constant 0 : index
    %49 = vector.load %arg4[%c32_22, %c0_23] : memref<105x32xf32, #tpu.memory_space<vmem>>, vector<32x32xf32>
    %c64_24 = arith.constant 64 : index
    %c0_25 = arith.constant 0 : index
    %50 = vector.load %arg4[%c64_24, %c0_25] : memref<105x32xf32, #tpu.memory_space<vmem>>, vector<1x32xf32>
    %c72 = arith.constant 72 : index
    %c0_26 = arith.constant 0 : index
    %51 = vector.load %arg4[%c72, %c0_26] : memref<105x32xf32, #tpu.memory_space<vmem>>, vector<32x32xf32>
    %c104 = arith.constant 104 : index
    %c0_27 = arith.constant 0 : index
    %52 = vector.load %arg4[%c104, %c0_27] : memref<105x32xf32, #tpu.memory_space<vmem>>, vector<1x32xf32>
    %cst_28 = arith.constant dense<0.000000e+00> : vector<16x32xf32>
    %53 = tpu.matmul %1, %48, %cst_28 {dimension_numbers = #tpu.dot_dimension_numbers<[1], [0], [0], [1], [0, 0, 1, 1], [], []>} : vector<16x32xf32>, vector<32x32xf32>, vector<16x32xf32> -> vector<16x32xf32>
    %cst_29 = arith.constant dense<0.000000e+00> : vector<16x32xf32>
    %54 = tpu.matmul %47, %49, %cst_29 {dimension_numbers = #tpu.dot_dimension_numbers<[1], [0], [0], [1], [0, 0, 1, 1], [], []>} : vector<16x32xf32>, vector<32x32xf32>, vector<16x32xf32> -> vector<16x32xf32>
    %55 = arith.addf %53, %54 : vector<16x32xf32>
    %56 = vector.broadcast %50 : vector<1x32xf32> to vector<16x32xf32>
    %57 = arith.addf %55, %56 : vector<16x32xf32>
    %58 = arith.negf %57 : vector<16x32xf32>
    %59 = math.exp %58 : vector<16x32xf32>
    %cst_30 = arith.constant 1.000000e+00 : f32
    %60 = vector.broadcast %cst_30 : f32 to vector<16x32xf32>
    %61 = arith.addf %60, %59 : vector<16x32xf32>
    %62 = arith.divf %60, %61 : vector<16x32xf32>
    %63 = arith.mulf %57, %62 : vector<16x32xf32>
    %cst_31 = arith.constant dense<0.000000e+00> : vector<16x32xf32>
    %64 = tpu.matmul %63, %51, %cst_31 {dimension_numbers = #tpu.dot_dimension_numbers<[1], [0], [0], [1], [0, 0, 1, 1], [], []>} : vector<16x32xf32>, vector<32x32xf32>, vector<16x32xf32> -> vector<16x32xf32>
    %65 = arith.addf %1, %64 : vector<16x32xf32>
    %66 = vector.broadcast %52 : vector<1x32xf32> to vector<16x32xf32>
    %67 = arith.addf %65, %66 : vector<16x32xf32>
    %68 = vector.broadcast %2 : vector<16x1xf32> to vector<16x32xf32>
    %69 = arith.mulf %67, %68 : vector<16x32xf32>
    %c0_32 = arith.constant 0 : index
    %c0_33 = arith.constant 0 : index
    %70 = vector.load %arg5[%c0_32, %c0_33] : memref<16x32xf32, #tpu.memory_space<vmem>>, vector<16x32xf32>
    tpu.vector_store %arg5[%c0_32, %c0_33], %69 {strides = array<i32>} : memref<16x32xf32, #tpu.memory_space<vmem>>, vector<16x32xf32>,
    return
  }
}

</mosaic_0001>

<bundles_post_ra>
// kernel: tpu_custom_call.1
= control target key start
LH: loop header
LB: loop body
LE: loop exit
PB: predicated region body
PF: predicated region fallthrough
CT: control target
= control target key end

     0   :  { %12 = vsyncpa [#allocation3], 0  ;;  %vm37_vm0 = vcmask 261120   ;;  %s1675_s0 = inlined_call_operand.vmem [shape: f32[16,33], index: 0, kind: input, shape index: {}]   ;;  %s1676_s1 = inlined_call_operand.vmem [shape: s32[2,256], index: 1, kind: input, shape index: {}]   ;;  %s1677_s2 = inlined_call_operand.vmem [shape: f32[16,256], index: 2, kind: input, shape index: {}]   ;;  %s1678_s3 = inlined_call_operand.vmem [shape: f32[112,33], index: 3, kind: input, shape index: {}]   ;;  %s1679_s4 = inlined_call_operand.vmem [shape: f32[105,32], index: 4, kind: input, shape index: {}]   ;;  %s1680_s5 = inlined_call_operand.hbm [shape: f32[16,32], index: 5, kind: output, shape index: {0}]   ;;  %s1681_s6 = inlined_call_operand.hbm [shape: f32[32,256], index: 6, kind: output, shape index: {1}]  }
   0x1   :  { %v29_v0 = vld [vmem:[%s1678_s3] sm:$0xff]  ;;  %v30_v1 = vld [vmem:[%s1678_s3 + $0x8] sm:$0xff]  ;;  %v31_v2 = vld [vmem:[%s1678_s3 + $0x10] sm:$0xff] }
   0x2   :  { %v1178_v3 = vpack.c.bf16 %v30_v1, %v29_v0  ;;  %v32_v4 = vld [vmem:[%s1678_s3 + $0x18] sm:$0xff]  ;;  %v1440_v5 = vld [vmem:[%s1675_s0] sm:$0xff]  ;;  %v34_v8 = vld [vmem:[%s1678_s3 + $0x28] sm:$0xff] }
   0x3   :  { %v33_v6 = vld [vmem:[%s1678_s3 + $0x20] sm:$0xff]  ;;  %v1182_v7 = vpack.c.bf16 %v32_v4, %v31_v2  ;;  %1131 = vmatprep.mubr.msk.f32.mxu0 %vm37_vm0, %v1440_v5  ;;  %v35_v9 = vld [vmem:[%s1678_s3 + $0x30] sm:$0xff]  ;;  %1142 = vmatprep.mubr.msk.f32.mxu1 %vm37_vm0, %v1440_v5  ;;  %v36_v11 = vld [vmem:[%s1678_s3 + $0x38] sm:$0xff] }
   0x4   :  { %1179 = vmatprep.subr.bf16.mxu0 %v1178_v3  ;;  %v1186_v10 = vpack.c.bf16 %v34_v8, %v33_v6 }
   0x5   :  { %13 = vsyncpa [#allocation5], 0  ;;  %1181 = vmatpush3.bf16.msra.mxu0 %v1178_v3  ;;  %v1190_v12 = vpack.c.bf16 %v36_v11, %v35_v9  ;;  %v1461_v13 = vld [vmem:[%s1675_s0 + $0x8] sm:$0xff]  ;;  %v196_v14 = vlaneseq  ;;  %v1380_v16 = vmov 0.0   ;;  %v239_v28 = vld [vmem:[%s1677_s2] sm:$0xff]  ;;  %vm275_vm13 = vcmask 392192  }
   0x6   :  { %1183 = vmatprep.subr.bf16.mxu0 %v1182_v7  ;;  %1187 = vmatprep.subr.bf16.mxu1 %v1186_v10  ;;  %v26_v17 = vld [vmem:[%s1676_s1] ss:$2 sm:$0x3]  ;;  %v1034_v18 = vld [vmem:[%s1676_s1 + $0x1] ss:$2 sm:$0x3] }
   0x7   :  { %1189 = vmatpush3.bf16.msra.mxu1 %v1186_v10  ;;  %v1467_v15 = vshrl.u32 %v196_v14, 7  ;;  %v240_v27 = vld [vmem:[%s1677_s2 + $0x8] sm:$0xff]  ;;  %v242_v31 = vld [vmem:[%s1677_s2 + $0x18] sm:$0xff]  ;;  %v1381_v32 = vmov 1.0|1.0   ;;  %v241_v34 = vld [vmem:[%s1677_s2 + $0x10] sm:$0xff] }
   0x8   :  { %1191 = vmatprep.subr.bf16.mxu1 %v1190_v12  ;;  %v1202_v33 = vpack.c.bf16 %v242_v31, %v240_v27  ;;  %v1204_v35 = vpack.c.bf16 %v241_v34, %v239_v28  ;;  %v194_v40 = vld [vmem:[%s1678_s3 + $0x40] sm:$0xff]  ;;  %v195_v41 = vld [vmem:[%s1678_s3 + $0x48] sm:$0xff]  ;;  %v1539_v46 = vld [vmem:[%s1678_s3 + $0x50] sm:$0xff]  ;;  %v1382_v47 = vmov 32   ;;  %s1384_s12 = smov [#allocation4]  }
   0x9   :  { %1185 = vmatpush3.bf16.msra.mxu0 %v1182_v7  ;;  %v1478_v19 = vadd.s32 8, %v1467_v15  ;;  %v201_v20 = vsub.s32 0, %v1467_v15  ;;  %v205_v21 = vsub.s32 1, %v1467_v15  ;;  %v620_v22 = vsub.s32 5, %v1467_v15  ;;  %1258 = vset.pattern.permute.xlu1 %v1382_v47  ;;  %v1545_v48 = vld [vmem:[%s1678_s3 + $0x58] sm:$0xff]  ;;  %v1551_v49 = vld [vmem:[%s1678_s3 + $0x60] sm:$0xff] }
   0xa   :  { %439 = vperm.xlu1 %1258, %v1539_v46   ;;  %v1557_v50 = vld [vmem:[%s1678_s3 + $0x68] sm:$0xff]  ;;  %s1019_s13 = sshll.u32 %s1384_s12, 4  ;;  %s1020_s13 = int_to_ptr.vmem [resolvable:$true] %s1019_s13 }
   0xb   :  { %1193 = vmatpush3.bf16.msra.mxu1 %v1190_v12  ;;  %v1483_v23 = vrot.slane %v26_v17, %v201_v20  ;;  %v1485_v24 = vrot.slane %v26_v17, %v205_v21  ;;  %v222_v25 = vrot.slane %v1034_v18, %v201_v20  ;;  %v226_v26 = vrot.slane %v1034_v18, %v205_v21  ;;  %s1332_s3 = scalar_lea.vmem %s1020_s13, 1024  ;;  %p1337_p1 = scmp.lt.s32.totalorder %s1020_s13, %s1020_s13 }
   0xc   :  { %1132 = vmatmul.mubr.msk.f32.vlgmr.msra.gmra.mrb[0].mxu0 %vm37_vm0, %v1461_v13  ;;  %v1493_v29 = vrot.slane %v240_v27, %v620_v22  ;;  %v1495_v30 = vrot.slane %v239_v28, %v620_v22  ;;  %p1333_p0 = scmp.ne.s32.totalorder %s1020_s13, %s1332_s3  ;;  %p1338_p2 = scmp.lt.s32.totalorder %s1332_s3, %s1332_s3 }
   0xd   :  { %352 = vmatprep.mubr.f32.mxu0 %v1380_v16  ;;  %vm208_vm1 = vcmp.eq.s32.totalorder %v1467_v15, %v1485_v24  ;;  %vm210_vm2 = vcmp.eq.s32.totalorder %v1478_v19, %v1485_v24  ;;  %vm207_vm3 = vcmp.eq.s32.totalorder %v1467_v15, %v1483_v23  ;;  %vm209_vm4 = vcmp.eq.s32.totalorder %v1478_v19, %v1483_v23  ;;  %v713_v24 = vld [vmem:[%s1679_s4 + $0x10] sm:$0xff] }
   0xe   :  { %1143 = vmatmul.mubr.msk.f32.vlgmr.msra.gmra.mrb[0].mxu1 %vm37_vm0, %v1461_v13  ;;  %vm1194_vm5 = vmpackc.low %vm210_vm2, %vm208_vm1  ;;  %vm228_vm6 = vcmp.eq.s32.totalorder %v1467_v15, %v226_v26  ;;  %vm230_vm7 = vcmp.eq.s32.totalorder %v1478_v19, %v226_v26  ;;  %vm227_vm8 = vcmp.eq.s32.totalorder %v1467_v15, %v222_v25  ;;  %vm229_vm9 = vcmp.eq.s32.totalorder %v1478_v19, %v222_v25  ;;  %v714_v19 = vld [vmem:[%s1679_s4 + $0x18] sm:$0xff]  ;;  %p1339_p3 = por %p1338_p2, %p1337_p1 }
   0xf   :  { %529 = vmatprep.mubr.f32.mxu1 %v1380_v16  ;;  %1195 = vmatprep.subr.msk.bf16.mxu0 %vm1194_vm5, %v1381_v32  ;;  %vm1196_vm10 = vmpackc.low %vm209_vm4, %vm207_vm3 }
  0x10   :  { %1197 = vmatpush1.bf16.msk.msra.mxu0 %vm1196_vm10, %v1381_v32  ;;  %vm1198_vm11 = vmpackc.low %vm230_vm7, %vm228_vm6  ;;  %444 = vperm.xlu1 %1258, %v1545_v48   ;;  %p1340_p4 = pnand %p1339_p3, %p1333_p0 }
  0x11   :  { %1199 = vmatprep.subr.msk.bf16.mxu0 %vm1198_vm11, %v1381_v32  ;;  %vm1200_vm12 = vmpackc.low %vm229_vm9, %vm227_vm8 }
  0x14   :  { %1201 = vmatpush1.bf16.msk.msra.mxu0 %vm1200_vm12, %v1381_v32  ;;  %449 = vperm.xlu1 %1258, %v1551_v49  }
  0x15   :  { %1203 = vmatprep.subr.bf16.mxu0 %v1202_v33 }
  0x18   :  { %1205 = vmatpush1.bf16.msra.mxu0 %v1204_v35  ;;  %454 = vperm.xlu1 %1258, %v1557_v50  }
  0x1c   :  { %991 = vperm.xlu1 %1258, %v1440_v5  }
  0x20   :  { %995 = vperm.xlu1 %1258, %v1461_v13  }
  0xdf   :  { %v1133_v36 = vpop.f32.mrb[0].mxu0 }
  0xe0   :  { %v110_v37 = vpop.f32.mrb[1].mxu0 }
  0xe1   :  { %243 = vxpose.xlu0.b32.start [1/6] (short) (narrow) %v110_v37, 32  ;;  %v1144_v38 = vpop.f32.mrb[0].mxu1 }
  0xe2   :  { %v185_v39 = vpop.f32.mrb[1].mxu1 }
  0xe5   :  { %244 = vxpose.xlu0.b32.cont [2/6] (short) (narrow) %v1133_v36, 32 }
  0xe9   :  { %245 = vxpose.xlu0.b32.cont [3/6] (short) (narrow) %v185_v39, 32 }
  0xed   :  { %246 = vxpose.xlu0.b32.cont [4/6] (short) (narrow) %v1144_v38, 32 }
  0xf1   :  { %247 = vxpose.xlu0.b32.cont [5/6] (short) (narrow) %v194_v40, 32 }
  0xf5   :  { %248 = vxpose.xlu0.b32.end [6/6] (short) (narrow) %v195_v41, 32 }
 0x11e   :  { %1259 = vset.pattern.permute.xlu0 %v1382_v47 }
 0x161   :  { %v259_v42 = vpop.trf.xlu0 }
 0x162   :  { %1055 = vmatmul.mubr.msk.f32.vlgmr.msra.gmra.mrb[2].mxu0 %vm275_vm13, %v259_v42 }
 0x163   :  { %358 = vmatprep.mubr.f32.mxu0 %v1380_v16 }
 0x165   :  { %v260_v43 = vpop.trf.xlu0 }
 0x166   :  { %1056 = vmatmul.mubr.msk.f32.gmra.mrb[4].mxu0 %vm275_vm13, %v260_v43 }
 0x167   :  { %364 = vmatprep.mubr.f32.mxu0 %v1380_v16 }
 0x169   :  { %v261_v44 = vpop.trf.xlu0 }
 0x16a   :  { %1057 = vmatmul.mubr.msk.f32.gmra.mrb[6].mxu0 %vm275_vm13, %v261_v44 }
 0x16b   :  { %370 = vmatprep.mubr.f32.mxu0 %v1380_v16 }
 0x16d   :  { %v262_v45 = vpop.trf.xlu0 }
 0x16e   :  { %1058 = vmatmul.mubr.msk.f32.gmra.mrb[8].mxu0 %vm275_vm13, %v262_v45 }
 0x235   :  { %v354_v51 = vpop.f32.mrb[2].mxu0 }
 0x236   :  { %v1059_v52 = vmul.f32 -1.442695, %v354_v51  ;;  %v356_v53 = vpop.f32.mrb[3].mxu0 }
 0x237   :  { %v1060_v54 = vmul.f32 -1.442695, %v356_v53 }
 0x238   :  { %1260 = vpow2.f32 %v1059_v52 }
 0x239   :  { %1262 = vpow2.f32 %v1060_v54  ;;  %v360_v55 = vpop.f32.mrb[4].mxu0  ;;  %v440_v54 = vpop.permute.xlu1 %439 }
 0x23a   :  { %v1061_v56 = vmul.f32 -1.442695, %v360_v55  ;;  %v362_v57 = vpop.f32.mrb[5].mxu0 }
 0x23b   :  { %v1062_v58 = vmul.f32 -1.442695, %v362_v57 }
 0x23c   :  { %1264 = vpow2.f32 %v1061_v56 }
 0x23d   :  { %1266 = vpow2.f32 %v1062_v58  ;;  %v366_v59 = vpop.f32.mrb[6].mxu0 }
 0x23e   :  { %v1063_v60 = vmul.f32 -1.442695, %v366_v59  ;;  %v368_v61 = vpop.f32.mrb[7].mxu0 }
 0x23f   :  { %v1064_v62 = vmul.f32 -1.442695, %v368_v61 }
 0x240   :  { %1268 = vpow2.f32 %v1063_v60 }
 0x241   :  { %1270 = vpow2.f32 %v1064_v62  ;;  %v372_v63 = vpop.f32.mrb[8].mxu0 }
 0x242   :  { %v1261_v0 = vpop.eup %1260  ;;  %v1065_v1 = vmul.f32 -1.442695, %v372_v63  ;;  %v374_v2 = vpop.f32.mrb[9].mxu0 }
 0x243   :  { %v1263_v3 = vpop.eup %1262  ;;  %v401_v4 = vadd.f32 1.0, %v1261_v0  ;;  %v1066_v6 = vmul.f32 -1.442695, %v374_v2 }
 0x244   :  { %v402_v7 = vadd.f32 1.0, %v1263_v3  ;;  %1272 = vpow2.f32 %v1065_v1 }
 0x245   :  { %1274 = vrcp.f32 %v401_v4 }
 0x246   :  { %v1265_v8 = vpop.eup %1264  ;;  %1276 = vpow2.f32 %v1066_v6 }
 0x247   :  { %v1267_v9 = vpop.eup %1266  ;;  %v403_v10 = vadd.f32 1.0, %v1265_v8  ;;  %1278 = vrcp.f32 %v402_v7 }
 0x248   :  { %v404_v11 = vadd.f32 1.0, %v1267_v9 }
 0x249   :  { %1280 = vrcp.f32 %v403_v10 }
 0x24a   :  { %v1269_v12 = vpop.eup %1268  ;;  %1282 = vrcp.f32 %v404_v11 }
 0x24b   :  { %v1271_v14 = vpop.eup %1270  ;;  %v405_v17 = vadd.f32 1.0, %v1269_v12 }
 0x24c   :  { %v406_v20 = vadd.f32 1.0, %v1271_v14 }
 0x24d   :  { %1284 = vrcp.f32 %v405_v17 }
 0x24e   :  { %v1273_v18 = vpop.eup %1272 }
 0x24f   :  { %v407_v21 = vadd.f32 1.0, %v1273_v18  ;;  %v1275_v22 = vpop.eup %1274 }
 0x250   :  { %v1277_v25 = vpop.eup %1276  ;;  %v425_v32 = vmul.f32 %v1275_v22, %v354_v51  ;;  %v1383_v51 = vmov 1.0  }
 0x251   :  { %1286 = vrcp.f32 %v407_v21  ;;  %v1279_v26 = vpop.eup %1278  ;;  %v408_v27 = vadd.f32 1.0, %v1277_v25 }
 0x252   :  { %1288 = vrcp.f32 %v406_v20  ;;  %v426_v34 = vmul.f32 %v1279_v26, %v356_v53 }
 0x253   :  { %v1281_v28 = vpop.eup %1280  ;;  %1290 = vrcp.f32 %v408_v27 }
 0x254   :  { %v1283_v31 = vpop.eup %1282  ;;  %v427_v33 = vmul.f32 %v1281_v28, %v360_v55  ;;  %v445_v55 = vpop.permute.xlu1 %444 }
 0x255   :  { %v428_v35 = vmul.f32 %v1283_v31, %v362_v57 }
 0x256   :  { %v1208_v36 = vpack.c.bf16 %v427_v33, %v425_v32 }
 0x257   :  { %v1206_v37 = vpack.c.bf16 %v428_v35, %v426_v34  ;;  %v1285_v38 = vpop.eup %1284 }
 0x258   :  { %v429_v41 = vmul.f32 %v1285_v38, %v366_v59  ;;  %v450_v1 = vpop.permute.xlu1 %449 }
 0x259   :  { %1207 = vmatprep.subr.bf16.mxu1 %v1206_v37 }
 0x25a   :  { %1209 = vmatpush1.bf16.msra.mxu1 %v1208_v36 }
 0x25b   :  { %v1287_v39 = vpop.eup %1286 }
 0x25c   :  { %v1289_v40 = vpop.eup %1288  ;;  %v431_v42 = vmul.f32 %v1287_v39, %v372_v63  ;;  %v455_v11 = vpop.permute.xlu1 %454 }
 0x25d   :  { %v1291_v43 = vpop.eup %1290  ;;  %v430_v45 = vmul.f32 %v1289_v40, %v368_v61 }
 0x25e   :  { %v1212_v44 = vpack.c.bf16 %v431_v42, %v429_v41  ;;  %v432_v47 = vmul.f32 %v1291_v43, %v374_v2 }
 0x260   :  { %v1210_v52 = vpack.c.bf16 %v432_v47, %v430_v45 }
 0x262   :  { %1211 = vmatprep.subr.bf16.mxu1 %v1210_v52 }
 0x263   :  { %1213 = vmatpush1.bf16.msra.mxu1 %v1212_v44 }
 0x266   :  { %1067 = vmatmul.mubr.msk.f32.vlgmr.msra.gmra.mrb[2].mxu1 %vm37_vm0, %v1539_v46  ;;  %v715_v46 = vld [vmem:[%s1679_s4 + $0x20] sm:$0xff] }
 0x267   :  { %535 = vmatprep.mubr.f32.mxu1 %v1380_v16 }
 0x26a   :  { %1068 = vmatmul.mubr.msk.f32.gmra.mrb[4].mxu1 %vm37_vm0, %v1545_v48  ;;  %v716_v48 = vld [vmem:[%s1679_s4 + $0x28] sm:$0xff] }
 0x26b   :  { %541 = vmatprep.mubr.f32.mxu1 %v1380_v16 }
 0x26e   :  { %1069 = vmatmul.mubr.msk.f32.gmra.mrb[6].mxu1 %vm37_vm0, %v1551_v49  ;;  %v1222_v49 = vpack.c.bf16 %v716_v48, %v715_v46 }
 0x26f   :  { %547 = vmatprep.mubr.f32.mxu1 %v1380_v16  ;;  %v717_v16 = vld [vmem:[%s1679_s4 + $0x30] sm:$0xff] }
 0x270   :  { %1223 = vmatprep.subr.bf16.mxu0 %v1222_v49 }
 0x271   :  { %1225 = vmatpush3.bf16.msra.mxu0 %v1222_v49 }
 0x272   :  { %1070 = vmatmul.mubr.msk.f32.gmra.mrb[8].mxu1 %vm37_vm0, %v1557_v50  ;;  %v718_v50 = vld [vmem:[%s1679_s4 + $0x38] sm:$0xff] }
 0x273   :  { %1079 = vmatprep.mubr.msk.f32.mxu1 %vm208_vm1, %v1383_v51  ;;  %v1226_v53 = vpack.c.bf16 %v718_v50, %v717_v16 }
 0x275   :  { %1227 = vmatprep.subr.bf16.mxu0 %v1226_v53 }
 0x276   :  { %1229 = vmatpush3.bf16.msra.mxu0 %v1226_v53 }
 0x339   :  { %v531_v56 = vpop.f32.mrb[2].mxu1 }
 0x33a   :  { %v532_v57 = vadd.f32 %v531_v56, %v440_v54  ;;  %v533_v58 = vpop.f32.mrb[3].mxu1 }
 0x33b   :  { %v534_v59 = vadd.f32 %v533_v58, %v440_v54 }
 0x33c   :  { %v1071_v60 = vmul.f32 -1.442695, %v532_v57 }
 0x33d   :  { %v1072_v61 = vmul.f32 -1.442695, %v534_v59  ;;  %v537_v62 = vpop.f32.mrb[4].mxu1 }
 0x33e   :  { %1292 = vpow2.f32 %v1071_v60  ;;  %v538_v63 = vadd.f32 %v537_v62, %v445_v55  ;;  %v539_v0 = vpop.f32.mrb[5].mxu1 }
 0x33f   :  { %1294 = vpow2.f32 %v1072_v61  ;;  %v540_v2 = vadd.f32 %v539_v0, %v445_v55 }
 0x340   :  { %v1073_v3 = vmul.f32 -1.442695, %v538_v63 }
 0x341   :  { %v1074_v4 = vmul.f32 -1.442695, %v540_v2  ;;  %v543_v6 = vpop.f32.mrb[6].mxu1 }
 0x342   :  { %1296 = vpow2.f32 %v1073_v3  ;;  %v544_v7 = vadd.f32 %v543_v6, %v450_v1  ;;  %v545_v8 = vpop.f32.mrb[7].mxu1 }
 0x343   :  { %1298 = vpow2.f32 %v1074_v4  ;;  %v546_v9 = vadd.f32 %v545_v8, %v450_v1 }
 0x344   :  { %v1075_v10 = vmul.f32 -1.442695, %v544_v7 }
 0x345   :  { %v1076_v12 = vmul.f32 -1.442695, %v546_v9  ;;  %v549_v14 = vpop.f32.mrb[8].mxu1 }
 0x346   :  { %1300 = vpow2.f32 %v1075_v10  ;;  %v550_v17 = vadd.f32 %v549_v14, %v455_v11  ;;  %v551_v18 = vpop.f32.mrb[9].mxu1  ;;  %v720_v14 = vld [vmem:[%s1679_s4 + $0x48] sm:$0xff] }
 0x347   :  { %1302 = vpow2.f32 %v1076_v12  ;;  %v552_v20 = vadd.f32 %v551_v18, %v455_v11  ;;  %v1234_v12 = vpack.c.bf16 %v714_v19, %v713_v24 }
 0x348   :  { %v1293_v21 = vpop.eup %1292  ;;  %v1077_v22 = vmul.f32 -1.442695, %v550_v17 }
 0x349   :  { %v1295_v25 = vpop.eup %1294  ;;  %v578_v26 = vadd.f32 1.0, %v1293_v21  ;;  %v1078_v27 = vmul.f32 -1.442695, %v552_v20  ;;  %v723_v21 = vld [vmem:[%s1679_s4 + $0x60] sm:$0xff] }
 0x34a   :  { %v579_v28 = vadd.f32 1.0, %v1295_v25  ;;  %1304 = vpow2.f32 %v1077_v22  ;;  %v1087_v25 = vld [vmem:[%s1679_s4 + $0x40] ss:$0 sm:$0xff] }
 0x34b   :  { %1306 = vrcp.f32 %v578_v26 }
 0x34c   :  { %v1297_v31 = vpop.eup %1296  ;;  %1308 = vrcp.f32 %v579_v28 }
 0x34d   :  { %v1299_v32 = vpop.eup %1298  ;;  %v580_v33 = vadd.f32 1.0, %v1297_v31  ;;  %1310 = vpow2.f32 %v1078_v27 }
 0x34e   :  { %v581_v34 = vadd.f32 1.0, %v1299_v32 }
 0x34f   :  { %1312 = vrcp.f32 %v580_v33 }
 0x350   :  { %v1301_v35 = vpop.eup %1300  ;;  %1314 = vrcp.f32 %v581_v34 }
 0x351   :  { %v1303_v36 = vpop.eup %1302  ;;  %v582_v37 = vadd.f32 1.0, %v1301_v35 }
 0x352   :  { %v583_v38 = vadd.f32 1.0, %v1303_v36 }
 0x353   :  { %1316 = vrcp.f32 %v582_v37 }
 0x354   :  { %v1305_v39 = vpop.eup %1304  ;;  %1318 = vrcp.f32 %v583_v38 }
 0x355   :  { %v1307_v40 = vpop.eup %1306  ;;  %v584_v41 = vadd.f32 1.0, %v1305_v39 }
 0x356   :  { %v1309_v42 = vpop.eup %1308  ;;  %v602_v43 = vmul.f32 %v1307_v40, %v532_v57 }
 0x357   :  { %v1311_v44 = vpop.eup %1310  ;;  %v603_v45 = vmul.f32 %v1309_v42, %v534_v59  ;;  %1320 = vrcp.f32 %v584_v41 }
 0x358   :  { %610 = vst [vmem:[#allocation4] sm:$0xff] %v602_v43  ;;  %v626_v47 = vmul.f32 %v1495_v30, %v602_v43  ;;  %v585_v52 = vadd.f32 1.0, %v1311_v44 }
 0x359   :  { %v1313_v46 = vpop.eup %1312  ;;  %611 = vst [vmem:[#allocation4 + $0x8] sm:$0xff] %v603_v45  ;;  %v627_v48 = vmul.f32 %v1493_v29, %v603_v45 }
 0x35a   :  { %v1315_v16 = vpop.eup %1314  ;;  %v604_v49 = vmul.f32 %v1313_v46, %v538_v63  ;;  %1322 = vrcp.f32 %v585_v52 }
 0x35b   :  { %v605_v50 = vmul.f32 %v1315_v16, %v540_v2 }
 0x35c   :  { %612 = vst [vmem:[#allocation4 + $0x10] sm:$0xff] %v604_v49  ;;  %v628_v53 = vmul.f32 %v1495_v30, %v604_v49 }
 0x35d   :  { %v1317_v54 = vpop.eup %1316  ;;  %613 = vst [vmem:[#allocation4 + $0x18] sm:$0xff] %v605_v50  ;;  %v629_v55 = vmul.f32 %v1493_v29, %v605_v50 }
 0x35e   :  { %v1319_v56 = vpop.eup %1318  ;;  %v1216_v57 = vpack.c.bf16 %v628_v53, %v626_v47  ;;  %v606_v58 = vmul.f32 %v1317_v54, %v544_v7 }
 0x35f   :  { %v607_v59 = vmul.f32 %v1319_v56, %v546_v9  ;;  %v1214_v60 = vpack.c.bf16 %v629_v55, %v627_v48 }
 0x360   :  { %614 = vst [vmem:[#allocation4 + $0x20] sm:$0xff] %v606_v58  ;;  %v630_v61 = vmul.f32 %v1495_v30, %v606_v58 }
 0x361   :  { %v1321_v62 = vpop.eup %1320  ;;  %615 = vst [vmem:[#allocation4 + $0x28] sm:$0xff] %v607_v59  ;;  %v631_v63 = vmul.f32 %v1493_v29, %v607_v59  ;;  %1215 = vmatprep.subr.bf16.mxu1 %v1214_v60 }
 0x362   :  { %v608_v0 = vmul.f32 %v1321_v62, %v550_v17  ;;  %1217 = vmatpush1.bf16.xpose.msra.mxu1 %v1216_v57  ;;  %v721_v17 = vld [vmem:[%s1679_s4 + $0x50] sm:$0xff] }
 0x363   :  { %v1238_v18 = vpack.c.bf16 %v721_v17, %v720_v14 }
 0x364   :  { %v1323_v1 = vpop.eup %1322  ;;  %616 = vst [vmem:[#allocation4 + $0x30] sm:$0xff] %v608_v0  ;;  %v632_v2 = vmul.f32 %v1495_v30, %v608_v0  ;;  %v712_v30 = vld [vmem:[%s1679_s4 + $0x8] sm:$0xff] }
 0x365   :  { %v609_v3 = vmul.f32 %v1323_v1, %v552_v20  ;;  %v722_v20 = vld [vmem:[%s1679_s4 + $0x58] sm:$0xff] }
 0x366   :  { %v1220_v4 = vpack.c.bf16 %v632_v2, %v630_v61  ;;  %v1242_v22 = vpack.c.bf16 %v723_v21, %v722_v20 }
 0x367   :  { %617 = vst [vmem:[#allocation4 + $0x38] sm:$0xff] %v609_v3  ;;  %v633_v6 = vmul.f32 %v1493_v29, %v609_v3  ;;  %v711_v29 = vld [vmem:[%s1679_s4] sm:$0xff] }
 0x368   :  { %v1230_v15 = vpack.c.bf16 %v712_v30, %v711_v29 }
 0x369   :  { %v1218_v7 = vpack.c.bf16 %v633_v6, %v631_v63 }
 0x36a   :  { %1231 = vmatprep.subr.bf16.mxu0 %v1230_v15 }
 0x36b   :  { %1219 = vmatprep.subr.bf16.mxu1 %v1218_v7 }
 0x36c   :  { %1221 = vmatpush1.bf16.xpose.msra.mxu1 %v1220_v4 }
 0x36d   :  { %1239 = vmatprep.subr.bf16.mxu1 %v1238_v18 }
 0x373   :  { %1080 = vmatmul.mubr.msk.f32.vlgmr.msra.gmra.mrb[10].mxu1 %vm207_vm3, %v1383_v51 }
 0x374   :  { %1081 = vmatprep.mubr.msk.f32.mxu1 %vm210_vm2, %v1383_v51  ;;  %1241 = vmatpush3.bf16.msra.mxu1 %v1238_v18 }
 0x375   :  { %1243 = vmatprep.subr.bf16.mxu1 %v1242_v22 }
 0x377   :  { %1082 = vmatmul.mubr.msk.f32.gmra.mrb[12].mxu1 %vm209_vm4, %v1383_v51 }
 0x378   :  { %1245 = vmatpush3.bf16.msra.mxu1 %v1242_v22 }
 0x446   :  { %v700_v8 = vpop.f32.mrb[10].mxu1 }
 0x447   :  { %v709_v9 = vmul.f32 0.25, %v700_v8  ;;  %v702_v10 = vpop.f32.mrb[11].mxu1 }
 0x449   :  { %1153 = vmatprep.mubr.msk.f32.mxu0 %vm37_vm0, %v709_v9 }
 0x44a   :  { %v705_v23 = vpop.f32.mrb[12].mxu1 }
 0x44b   :  { %v710_v51 = vmul.f32 0.25, %v705_v23  ;;  %v707_v11 = vpop.f32.mrb[13].mxu1 }
 0x44d   :  { %1154 = vmatmul.mubr.msk.f32.vlgmr.msra.gmra.mrb[10].mxu0 %vm37_vm0, %v710_v51 }
 0x44e   :  { %1233 = vmatpush3.bf16.msra.mxu0 %v1230_v15  ;;  %1164 = vmatprep.mubr.msk.f32.mxu0 %vm37_vm0, %v1440_v5 }
 0x44f   :  { %1235 = vmatprep.subr.bf16.mxu0 %v1234_v12 }
 0x452   :  { %1237 = vmatpush3.bf16.msra.mxu0 %v1234_v12 }
 0x455   :  { %1165 = vmatmul.mubr.msk.f32.vlgmr.msra.gmra.mrb[10].mxu0 %vm37_vm0, %v1461_v13 }
 0x528   :  { %v1166_v26 = vpop.f32.mrb[10].mxu0 }
 0x529   :  { %v886_v27 = vadd.f32 %v1166_v26, %v1087_v25  ;;  %v872_v28 = vpop.f32.mrb[11].mxu0 }
 0x52a   :  { %v885_v31 = vadd.f32 %v1087_v25, %v872_v28 }
 0x52b   :  { %v1089_v32 = vmul.f32 -1.442695, %v886_v27 }
 0x52c   :  { %v1088_v33 = vmul.f32 -1.442695, %v885_v31 }
 0x52d   :  { %1324 = vpow2.f32 %v1089_v32 }
 0x52e   :  { %1326 = vpow2.f32 %v1088_v33 }
 0x537   :  { %v1325_v34 = vpop.eup %1324 }
 0x538   :  { %v1327_v35 = vpop.eup %1326  ;;  %v894_v36 = vadd.f32 1.0, %v1325_v34 }
 0x539   :  { %v893_v37 = vadd.f32 1.0, %v1327_v35 }
 0x53a   :  { %1328 = vrcp.f32 %v894_v36 }
 0x53b   :  { %1330 = vrcp.f32 %v893_v37 }
 0x544   :  { %v1329_v38 = vpop.eup %1328 }
 0x545   :  { %v1331_v39 = vpop.eup %1330  ;;  %v900_v41 = vmul.f32 %v1329_v38, %v886_v27 }
 0x546   :  { %v899_v40 = vmul.f32 %v1331_v39, %v885_v31 }
 0x548   :  { %1175 = vmatprep.mubr.msk.f32.mxu1 %vm37_vm0, %v899_v40 }
 0x549   :  { %1176 = vmatmul.mubr.msk.f32.vlgmr.msra.gmra.mrb[14].mxu1 %vm37_vm0, %v900_v41 }
 0x54a   :  { %1343 = shalt.err (!%p1340_p4)
}
 0x54b   :  { %s1344_s16 = scalar_lea.hbm %s1681_s6, 1024 }
 0x54c   :  { %p1345_p5 = scmp.ne.s32.totalorder %s1681_s6, %s1344_s16  ;;  %p1348_p6 = scmp.lt.u32.totalorder %s1344_s16, %s1681_s6 }
 0x54e   :  { %p1350_p7 = pnand %p1348_p6, %p1345_p5 }
 0x550   :  { %1353 = shalt.err (!%p1350_p7)
}
 0x551   :  { %s1385_s20 = smov 256   ;;  %s1386_s21 = smov 16   ;;  %v992_v42 = vpop.permute.xlu1 %991  ;;  %v1092_v43 = vld [vmem:[%s1679_s4 + $0x68] ss:$0 sm:$0xff] }
 0x552   :  { %1025 = dma.vmem_to_hbm [thread:$0]  %s1020_s13, 1024, %s1681_s6, [#allocation5], %s1385_s20, %s1385_s20, %s1386_s21  }
 0x553   :  { %s1387_s25 = smov [#allocation2]  }
 0x554   :  { %s1007_s26 = sshll.u32 %s1387_s25, 4  ;;  %s1008_s26 = int_to_ptr.vmem [resolvable:$true] %s1007_s26 }
 0x555   :  { %v996_v48 = vpop.permute.xlu1 %995  ;;  %s1354_s6 = scalar_lea.vmem %s1008_s26, 256  ;;  %p1359_p9 = scmp.lt.s32.totalorder %s1008_s26, %s1008_s26 }
 0x556   :  { %p1355_p8 = scmp.ne.s32.totalorder %s1008_s26, %s1354_s6  ;;  %p1360_p10 = scmp.lt.s32.totalorder %s1354_s6, %s1354_s6 }
 0x558   :  { %p1361_p11 = por %p1360_p10, %p1359_p9 }
 0x55a   :  { %p1362_p12 = pnand %p1361_p11, %p1355_p8 }
 0x61c   :  { %v1177_v44 = vpop.f32.mrb[14].mxu1 }
 0x61d   :  { %v983_v45 = vadd.f32 %v1177_v44, %v1461_v13  ;;  %v973_v47 = vpop.f32.mrb[15].mxu1 }
 0x61e   :  { %v982_v52 = vadd.f32 %v973_v47, %v1440_v5 }
 0x61f   :  { %v989_v46 = vadd.f32 %v1092_v43, %v983_v45 }
 0x620   :  { %v988_v16 = vadd.f32 %v1092_v43, %v982_v52 }
 0x621   :  { %v999_v49 = vmul.f32 %v996_v48, %v989_v46 }
 0x622   :  { %v998_v50 = vmul.f32 %v992_v42, %v988_v16 }
 0x623   :  { %1001 = vst.msk [vmem:[#allocation2 + $0x8] sm:$0xff] %vm37_vm0, %v999_v49 }
 0x624   :  { %1000 = vst.msk [vmem:[#allocation2] sm:$0xff] %vm37_vm0, %v998_v50 }
 0x625   :  { %1365 = shalt.err (!%p1362_p12)
}
 0x626   :  { %s1366_s28 = scalar_lea.hbm %s1680_s5, 256 }
 0x627   :  { %p1367_p13 = scmp.ne.s32.totalorder %s1680_s5, %s1366_s28  ;;  %p1370_p0 = scmp.lt.u32.totalorder %s1366_s28, %s1680_s5 }
 0x629   :  { %p1372_p1 = pnand %p1370_p0, %p1367_p13 }
 0x62b   :  { %1375 = shalt.err (!%p1372_p1)
}
 0x62c   :  { %s1388_s8 = smov 128   ;;  %s1389_s9 = smov 8  }
 0x62d   :  { %1013 = dma.vmem_to_hbm [thread:$0]  %s1008_s26, 256, %s1680_s5, [#allocation3], %s1388_s8, %s1388_s8, %s1389_s9  }
 0x62e   :  { %1376 = dma.done.wait [#allocation3], 256  }
 0x62f   :  { %1377 = vsyncadd [#allocation3], 4294967040 }
 0x630   :  { %1378 = dma.done.wait [#allocation5], 1024  }
 0x631   :  { %1379 = vsyncadd [#allocation5], 4294966272 }
 0x632   :  { %1032 = vsyncpa [#allocation3], 1 }
 0x633   :  { %1033 = vsyncpa [#allocation5], 1 }

</bundles_post_ra>
